<compile_context>
chip_gen: v7x
topology: tpu7x:2x2x1
jax: 0.10.0
libtpu: 0.0.40
codegen_flags: <defaults>
</compile_context>

<pallas_src>
import functools

import jax
import jax.numpy as jnp
from jax import lax
from jax.experimental import pallas as pl
from jax.experimental.pallas import tpu as pltpu


def _gacp_kernel(x_ref, mx_ref, av_ref, max_acc, sum_acc, *, L, TL):
    """One (TN, C, TL) tile: update running max / running sum over L."""
    li = pl.program_id(1)

    @pl.when(li == 0)
    def _():
        max_acc[...] = jnp.full_like(max_acc, -jnp.inf)
        sum_acc[...] = jnp.zeros_like(sum_acc)

    x = x_ref[...]  # (TN, C, TL), input dtype (no full-tile f32 cast)

    if L % TL != 0:
        # Last L-tile is partially out of bounds: mask padded lanes so they do
        # not contaminate the max (-inf) or the sum (0).
        lane = lax.broadcasted_iota(jnp.int32, x.shape, dimension=2)
        valid = (li * TL + lane) < L
        x_for_max = jnp.where(valid, x, jnp.array(-jnp.inf, dtype=x.dtype))
        x_for_sum = jnp.where(valid, x, jnp.array(0, dtype=x.dtype))
    else:
        x_for_max = x
        x_for_sum = x

    max_acc[...] = jnp.maximum(
        max_acc[...], jnp.max(x_for_max, axis=-1).astype(jnp.float32)
    )
    sum_acc[...] = sum_acc[...] + jnp.sum(x_for_sum, axis=-1, dtype=jnp.float32)

    @pl.when(li == pl.num_programs(1) - 1)
    def _():
        mx_ref[...] = max_acc[...].astype(mx_ref.dtype)
        av_ref[...] = (sum_acc[...] * (1.0 / L)).astype(av_ref.dtype)


def _vmem_limit_bytes():
    """Scoped-VMEM budget, adapted to the chip generation (v7x has only 64 MiB)."""
    try:
        cap = pltpu.get_tpu_info().vmem_capacity_bytes
    except Exception:
        cap = 64 * 1024 * 1024  # conservative fallback
    return int(cap * 3 // 4)


def _choose_tiles(N, C, L, itemsize, vmem_limit):
    # Batch tile: 8 sublanes for dense output stores when possible.
    # (For large N this can be swept 8..32 to further amortize grid-step cost.)
    TN = 8 if N >= 8 else N
    # Input tile budget (~1/8 of usable VMEM; the pipeline double-buffers it).
    budget = max(2 * 1024 * 1024, min(8 * 1024 * 1024, vmem_limit // 8))
    tl = budget // max(1, TN * C * itemsize)
    if tl >= L:
        TL = L  # whole L fits: no reduction tiling needed
    else:
        TL = min(L, max(128, (tl // 128) * 128))  # lane-dense multiple of 128
    return TN, TL


def gacp1d(x, *, block_n=None, block_l=None):
    """Global AdaptiveConcatPool1d(1) + Flatten: (N, C, L) -> (N, 2C)."""
    N, C, L = x.shape
    itemsize = jnp.dtype(x.dtype).itemsize
    vmem_limit = _vmem_limit_bytes()
    TN, TL = _choose_tiles(N, C, L, itemsize, vmem_limit)
    if block_n is not None:
        TN = min(block_n, N)
    if block_l is not None:
        TL = min(block_l, L)

    grid = (pl.cdiv(N, TN), pl.cdiv(L, TL))
    kernel = functools.partial(_gacp_kernel, L=L, TL=TL)

    mx, av = pl.pallas_call(
        kernel,
        out_shape=(
            jax.ShapeDtypeStruct((N, C), x.dtype),
            jax.ShapeDtypeStruct((N, C), x.dtype),
        ),
        grid_spec=pltpu.PrefetchScalarGridSpec(
            num_scalar_prefetch=0,
            grid=grid,
            in_specs=[pl.BlockSpec((TN, C, TL), lambda n, l: (n, 0, l))],
            out_specs=[
                pl.BlockSpec((TN, C), lambda n, l: (n, 0)),
                pl.BlockSpec((TN, C), lambda n, l: (n, 0)),
            ],
            scratch_shapes=[
                pltpu.VMEM((TN, C), jnp.float32),  # running max
                pltpu.VMEM((TN, C), jnp.float32),  # running sum
            ],
        ),
        compiler_params=pltpu.CompilerParams(
            dimension_semantics=("parallel", "arbitrary"),
            vmem_limit_bytes=vmem_limit,
        ),
        cost_estimate=pl.CostEstimate(
            flops=2 * N * C * L,
            transcendentals=0,
            bytes_accessed=N * C * L * itemsize + 2 * N * C * itemsize,
        ),
    )(x)

    # Two lane-dense halves from the kernel; concat here (XLA fuses it).
    return jnp.concatenate([mx, av], axis=1)


def gacp1d_ref(x):
    mx = jnp.max(x, axis=-1)
    av = jnp.mean(x, axis=-1)
    return jnp.concatenate([mx, av], axis=-1)


if __name__ == "__main__":
    key = jax.random.PRNGKey(0)

    # Small shape implied by the module: (batch=2, channels=4, length=16).
    N, C, L = 2, 4, 16
    x = jax.random.normal(key, (N, C, L), dtype=jnp.float32)
    out = jax.block_until_ready(gacp1d(x))
    ref = gacp1d_ref(x)
    assert out.shape == (N, 2 * C), out.shape
    assert jnp.allclose(out, ref, atol=1e-5, rtol=1e-5), "mismatch vs reference"

    # Second small check exercising the tiled-L reduction path with masking
    # (L not a multiple of TL) and a partial batch block (N not multiple of TN).
    N2, C2, L2 = 10, 8, 400
    x2 = jax.random.normal(jax.random.PRNGKey(1), (N2, C2, L2), dtype=jnp.float32)
    out2 = jax.block_until_ready(gacp1d(x2, block_n=8, block_l=128))
    ref2 = gacp1d_ref(x2)
    assert out2.shape == (N2, 2 * C2), out2.shape
    assert jnp.allclose(out2, ref2, atol=1e-4, rtol=1e-4), "mismatch vs reference (tiled)"

    print("KERNEL_OK")
</pallas_src>

<mosaic_0001>
module attributes {stable_mosaic.version = 11 : i64} {
  func.func @_gacp_kernel(%arg0: i32, %arg1: i32, %arg2: memref<2x4x16xf32, #tpu.memory_space<vmem>>, %arg3: memref<2x4xf32, #tpu.memory_space<vmem>>, %arg4: memref<2x4xf32, #tpu.memory_space<vmem>>, %arg5: memref<2x4xf32, #tpu.memory_space<vmem>>, %arg6: memref<2x4xf32, #tpu.memory_space<vmem>>) attributes {dimension_semantics = [#tpu.dimension_semantics<parallel>, #tpu.dimension_semantics<arbitrary>], iteration_bounds = array<i64: 1, 1>, scalar_prefetch = 0 : i64, scratch_operands = 2 : i64, tpu.core_type = #tpu.core_type<tc>, window_params = [{transform_indices = @transform_0, window_bounds = array<i64: 2, 4, 16>}, {transform_indices = @transform_1, window_bounds = array<i64: 2, 4>}, {transform_indices = @transform_2, window_bounds = array<i64: 2, 4>}]} {
    %c0_i32 = arith.constant 0 : i32
    %0 = arith.cmpi eq, %arg1, %c0_i32 : i32
    %1 = arith.extui %0 : i1 to i32
    %c0_i32_0 = arith.constant 0 : i32
    %2 = arith.cmpi ne, %1, %c0_i32_0 : i32
    scf.if %2 {
      %cst_14 = arith.constant 0xFF800000 : f32
      %15 = vector.broadcast %cst_14 : f32 to vector<2x4xf32>
      %c0_15 = arith.constant 0 : index
      %c0_16 = arith.constant 0 : index
      %16 = vector.load %arg5[%c0_15, %c0_16] : memref<2x4xf32, #tpu.memory_space<vmem>>, vector<2x4xf32>
      tpu.vector_store %arg5[%c0_15, %c0_16], %15 {strides = array<i32>} : memref<2x4xf32, #tpu.memory_space<vmem>>, vector<2x4xf32>,
      %cst_17 = arith.constant 0.000000e+00 : f32
      %17 = vector.broadcast %cst_17 : f32 to vector<2x4xf32>
      %c0_18 = arith.constant 0 : index
      %c0_19 = arith.constant 0 : index
      %18 = vector.load %arg6[%c0_18, %c0_19] : memref<2x4xf32, #tpu.memory_space<vmem>>, vector<2x4xf32>
      tpu.vector_store %arg6[%c0_18, %c0_19], %17 {strides = array<i32>} : memref<2x4xf32, #tpu.memory_space<vmem>>, vector<2x4xf32>,
    } else {
    }
    %c0 = arith.constant 0 : index
    %c0_1 = arith.constant 0 : index
    %c0_2 = arith.constant 0 : index
    %3 = vector.load %arg2[%c0, %c0_1, %c0_2] : memref<2x4x16xf32, #tpu.memory_space<vmem>>, vector<2x4x16xf32>
    %c0_3 = arith.constant 0 : index
    %c0_4 = arith.constant 0 : index
    %4 = vector.load %arg5[%c0_3, %c0_4] : memref<2x4xf32, #tpu.memory_space<vmem>>, vector<2x4xf32>
    %cst = arith.constant dense<0xFF800000> : vector<2x4xf32>
    %5 = vector.multi_reduction <maximumf>, %3, %cst [2] : vector<2x4x16xf32> to vector<2x4xf32>
    %6 = arith.maximumf %4, %5 : vector<2x4xf32>
    %c0_5 = arith.constant 0 : index
    %c0_6 = arith.constant 0 : index
    %7 = vector.load %arg5[%c0_5, %c0_6] : memref<2x4xf32, #tpu.memory_space<vmem>>, vector<2x4xf32>
    tpu.vector_store %arg5[%c0_5, %c0_6], %6 {strides = array<i32>} : memref<2x4xf32, #tpu.memory_space<vmem>>, vector<2x4xf32>,
    %c0_7 = arith.constant 0 : index
    %c0_8 = arith.constant 0 : index
    %8 = vector.load %arg6[%c0_7, %c0_8] : memref<2x4xf32, #tpu.memory_space<vmem>>, vector<2x4xf32>
    %cst_9 = arith.constant dense<0.000000e+00> : vector<2x4xf32>
    %9 = vector.multi_reduction <add>, %3, %cst_9 [2] : vector<2x4x16xf32> to vector<2x4xf32>
    %10 = arith.addf %8, %9 : vector<2x4xf32>
    %c0_10 = arith.constant 0 : index
    %c0_11 = arith.constant 0 : index
    %11 = vector.load %arg6[%c0_10, %c0_11] : memref<2x4xf32, #tpu.memory_space<vmem>>, vector<2x4xf32>
    tpu.vector_store %arg6[%c0_10, %c0_11], %10 {strides = array<i32>} : memref<2x4xf32, #tpu.memory_space<vmem>>, vector<2x4xf32>,
    %c0_i32_12 = arith.constant 0 : i32
    %12 = arith.cmpi eq, %arg1, %c0_i32_12 : i32
    %13 = arith.extui %12 : i1 to i32
    %c0_i32_13 = arith.constant 0 : i32
    %14 = arith.cmpi ne, %13, %c0_i32_13 : i32
    scf.if %14 {
      %c0_14 = arith.constant 0 : index
      %c0_15 = arith.constant 0 : index
      %15 = vector.load %arg5[%c0_14, %c0_15] : memref<2x4xf32, #tpu.memory_space<vmem>>, vector<2x4xf32>
      %c0_16 = arith.constant 0 : index
      %c0_17 = arith.constant 0 : index
      %16 = vector.load %arg3[%c0_16, %c0_17] : memref<2x4xf32, #tpu.memory_space<vmem>>, vector<2x4xf32>
      tpu.vector_store %arg3[%c0_16, %c0_17], %15 {strides = array<i32>} : memref<2x4xf32, #tpu.memory_space<vmem>>, vector<2x4xf32>,
      %c0_18 = arith.constant 0 : index
      %c0_19 = arith.constant 0 : index
      %17 = vector.load %arg6[%c0_18, %c0_19] : memref<2x4xf32, #tpu.memory_space<vmem>>, vector<2x4xf32>
      %cst_20 = arith.constant 6.250000e-02 : f32
      %18 = vector.broadcast %cst_20 : f32 to vector<2x4xf32>
      %19 = arith.mulf %17, %18 : vector<2x4xf32>
      %c0_21 = arith.constant 0 : index
      %c0_22 = arith.constant 0 : index
      %20 = vector.load %arg4[%c0_21, %c0_22] : memref<2x4xf32, #tpu.memory_space<vmem>>, vector<2x4xf32>
      tpu.vector_store %arg4[%c0_21, %c0_22], %19 {strides = array<i32>} : memref<2x4xf32, #tpu.memory_space<vmem>>, vector<2x4xf32>,
    } else {
    }
    return
  }
  func.func @transform_0(%arg0: i32, %arg1: i32) -> (i32, i32, i32) {
    %c0_i32 = arith.constant 0 : i32
    %c0_i32_0 = arith.constant 0 : i32
    return %arg0, %c0_i32, %arg1 : i32, i32, i32
  }
  func.func @transform_1(%arg0: i32, %arg1: i32) -> (i32, i32) {
    %c0_i32 = arith.constant 0 : i32
    %c0_i32_0 = arith.constant 0 : i32
    return %arg0, %c0_i32 : i32, i32
  }
  func.func @transform_2(%arg0: i32, %arg1: i32) -> (i32, i32) {
    %c0_i32 = arith.constant 0 : i32
    %c0_i32_0 = arith.constant 0 : i32
    return %arg0, %c0_i32 : i32, i32
  }
}

</mosaic_0001>

<bundles_post_ra>
// kernel: tpu_custom_call.1
= control target key start
LH: loop header
LB: loop body
LE: loop exit
PB: predicated region body
PF: predicated region fallthrough
CT: control target
= control target key end

     0   :  { %8 = vsyncpa [#allocation5], 0  ;;  %s262_s0 = inlined_call_operand.hbm [shape: f32[2,4,16], index: 0, kind: input, shape index: {}]   ;;  %s263_s1 = inlined_call_operand.hbm [shape: f32[2,4], index: 1, kind: output, shape index: {0}]   ;;  %s264_s2 = inlined_call_operand.hbm [shape: f32[2,4], index: 2, kind: output, shape index: {1}]  }
   0x1   :  { %9 = vsyncpa [#allocation6], 0 }
   0x2   :  { %10 = vsyncpa [#allocation9], 0  ;;  %s198_s9 = smov [#allocation4]   ;;  %s126_s13 = scalar_lea.hbm %s262_s0, 128 }
   0x3   :  { %s16_s10 = sshll.u32 %s198_s9, 4  ;;  %p127_p0 = scmp.ne.s32.totalorder %s262_s0, %s126_s13  ;;  %s17_s10 = int_to_ptr.vmem [resolvable:$true] %s16_s10 }
   0x4   :  { %p130_p1 = scmp.lt.u32.totalorder %s126_s13, %s262_s0 }
   0x6   :  { %p132_p2 = pnand %p130_p1, %p127_p0 }
   0x8   :  { %135 = shalt.err (!%p132_p2)
}
   0x9   :  { %s136_s18 = scalar_lea.vmem %s17_s10, 128  ;;  %p141_p4 = scmp.lt.s32.totalorder %s17_s10, %s17_s10 }
   0xa   :  { %p137_p3 = scmp.ne.s32.totalorder %s17_s10, %s136_s18  ;;  %p142_p5 = scmp.lt.s32.totalorder %s136_s18, %s136_s18 }
   0xc   :  { %p143_p6 = por %p142_p5, %p141_p4 }
   0xe   :  { %p144_p7 = pnand %p143_p6, %p137_p3 }
  0x10   :  { %147 = shalt.err (!%p144_p7)
}
  0x11   :  { %s199_s19 = smov 64   ;;  %s200_s20 = smov 4  }
  0x12   :  { %22 = dma.hbm_to_vmem [thread:$0]  %s262_s0, 128, %s17_s10, [#allocation5], %s199_s19, %s199_s19, %s200_s20  }
  0x13   :  { %192 = dma.done.wait [#allocation5], 128  }
  0x14   :  { %193 = vsyncadd [#allocation5], 4294967168  ;;  %vm36_vm0 = vcmask 125952   ;;  %v33_v0 = vld [vmem:[#allocation4] sm:$0xf]  ;;  %vm30_vm1 = vcmask 25600   ;;  %v45_v8 = vlaneseq }
  0x15   :  { %v34_v1 = vld [vmem:[#allocation4 + $0x4] sm:$0xf]  ;;  %v62_v2 = vsel %vm36_vm0, %v33_v0, 0.0  ;;  %v37_v3 = vsel %vm36_vm0, %v33_v0, -inf  ;;  %v201_v6 = vmov 0.0   ;;  %v202_v7 = vmov -inf  }
  0x16   :  { %63 = vadd.xlane.f32.xlu0 %v62_v2  ;;  %38 = vmax.xlane.f32.xlu1 %v37_v3  ;;  %v65_v4 = vsel %vm36_vm0, %v34_v1, 0.0  ;;  %v40_v5 = vsel %vm36_vm0, %v34_v1, -inf  ;;  %32 = vst.msk [vmem:[#allocation3] sm:$0x3] %vm30_vm1, %v201_v6  ;;  %31 = vst.msk [vmem:[#allocation2] sm:$0x3] %vm30_vm1, %v202_v7 }
  0x17   :  { %v46_v9 = vand.u32 127, %v45_v8  ;;  %v48_v10 = vshrl.u32 %v45_v8, 7  ;;  %vm55_vm2 = vcmask 1041409   ;;  %s203_s0 = smov [#allocation7]   ;;  %s204_s24 = smov [#allocation8]  }
  0x18   :  { %s96_s23 = sshll.u32 %s203_s0, 4  ;;  %s106_s25 = sshll.u32 %s204_s24, 4  ;;  %s97_s23 = int_to_ptr.vmem [resolvable:$true] %s96_s23  ;;  %s107_s25 = int_to_ptr.vmem [resolvable:$true] %s106_s25 }
  0x19   :  { %v49_v13 = vsub.s32 %v46_v9, %v48_v10  ;;  %s148_s26 = scalar_lea.vmem %s97_s23, 32  ;;  %p153_p9 = scmp.lt.s32.totalorder %s97_s23, %s97_s23 }
  0x1a   :  { %66 = vadd.xlane.f32.xlu0 %v65_v4  ;;  %41 = vmax.xlane.f32.xlu1 %v40_v5  ;;  %p149_p8 = scmp.ne.s32.totalorder %s97_s23, %s148_s26  ;;  %p154_p10 = scmp.lt.s32.totalorder %s148_s26, %s148_s26 }
  0x1c   :  { %p155_p11 = por %p154_p10, %p153_p9 }
  0x1d   :  { %v61_v18 = vld [vmem:[#allocation3] sm:$0x3]  ;;  %v35_v20 = vld [vmem:[#allocation2] sm:$0x3] }
  0x1e   :  { %p156_p12 = pnand %p155_p11, %p149_p8 }
  0xa3   :  { %v64_v11 = vpop.xlane.xlu0 %63  ;;  %v39_v12 = vpop.xlane.xlu1 %38 }
  0xa4   :  { %v73_v16 = vrot.slane %v64_v11, %v49_v13  ;;  %v50_v17 = vrot.slane %v39_v12, %v49_v13 }
  0xa7   :  { %v67_v14 = vpop.xlane.xlu0 %66  ;;  %v42_v15 = vpop.xlane.xlu1 %41 }
  0xa8   :  { %v77_v19 = vrot.slane %v67_v14, %v49_v13  ;;  %v54_v21 = vrot.slane %v42_v15, %v49_v13 }
  0xaa   :  { %v78_v22 = vsel %vm55_vm2, %v77_v19, %v73_v16  ;;  %v56_v23 = vsel %vm55_vm2, %v54_v21, %v50_v17 }
  0xab   :  { %v80_v24 = vadd.f32 %v78_v22, %v61_v18  ;;  %v58_v25 = vmax.f32 %v35_v20, %v56_v23 }
  0xad   :  { %81 = vst.msk [vmem:[#allocation3] sm:$0x3] %vm30_vm1, %v80_v24  ;;  %60 = vst.msk [vmem:[#allocation2] sm:$0x3] %vm30_vm1, %v58_v25 }
  0xb4   :  { %v85_v26 = vld [vmem:[#allocation2] sm:$0x3]  ;;  %v87_v27 = vld [vmem:[#allocation3] sm:$0x3] }
  0xb5   :  { %86 = vst.msk [vmem:[#allocation7] sm:$0x3] %vm30_vm1, %v85_v26  ;;  %v88_v28 = vmul.f32 0.0625, %v87_v27 }
  0xb6   :  { %159 = shalt.err (!%p156_p12)
}
  0xb7   :  { %s160_s29 = scalar_lea.hbm %s263_s1, 32 }
  0xb8   :  { %p161_p13 = scmp.ne.s32.totalorder %s263_s1, %s160_s29  ;;  %p164_p0 = scmp.lt.u32.totalorder %s160_s29, %s263_s1 }
  0xba   :  { %p166_p1 = pnand %p164_p0, %p161_p13 }
  0xbc   :  { %169 = shalt.err (!%p166_p1)
}
  0xbd   :  { %99 = dma.vmem_to_hbm [thread:$0]  %s97_s23, 32, %s263_s1, [#allocation6]   ;;  %89 = vst.msk [vmem:[#allocation8] sm:$0x3] %vm30_vm1, %v88_v28 }
  0xbe   :  { %s170_s8 = scalar_lea.vmem %s107_s25, 32  ;;  %p175_p3 = scmp.lt.s32.totalorder %s107_s25, %s107_s25 }
  0xbf   :  { %p171_p2 = scmp.ne.s32.totalorder %s107_s25, %s170_s8  ;;  %p176_p4 = scmp.lt.s32.totalorder %s170_s8, %s170_s8 }
  0xc1   :  { %p177_p5 = por %p176_p4, %p175_p3 }
  0xc3   :  { %p178_p6 = pnand %p177_p5, %p171_p2 }
  0xc5   :  { %181 = shalt.err (!%p178_p6)
}
  0xc6   :  { %s182_s11 = scalar_lea.hbm %s264_s2, 32 }
  0xc7   :  { %p183_p7 = scmp.ne.s32.totalorder %s264_s2, %s182_s11  ;;  %p186_p8 = scmp.lt.u32.totalorder %s182_s11, %s264_s2 }
  0xc9   :  { %p188_p9 = pnand %p186_p8, %p183_p7 }
  0xcb   :  { %191 = shalt.err (!%p188_p9)
}
  0xcc   :  { %109 = dma.vmem_to_hbm [thread:$0]  %s107_s25, 32, %s264_s2, [#allocation9]  }
  0xcd   :  { %194 = dma.done.wait [#allocation6], 32  }
  0xce   :  { %195 = vsyncadd [#allocation6], 4294967264 }
  0xcf   :  { %196 = dma.done.wait [#allocation9], 32  }
  0xd0   :  { %197 = vsyncadd [#allocation9], 4294967264 }
  0xd1   :  { %116 = vsyncpa [#allocation5], 1 }
  0xd2   :  { %117 = vsyncpa [#allocation6], 1 }
  0xd3   :  { %118 = vsyncpa [#allocation9], 1 }

</bundles_post_ra>
